<compile_context>
chip_gen: v5e
topology: v5e:2x2
jax: 0.10.0
libtpu: 0.0.40
codegen_flags: <defaults>
</compile_context>

<pallas_src>
import functools

import jax
import jax.numpy as jnp
from jax import lax
from jax.experimental import pallas as pl
from jax.experimental.pallas import tpu as pltpu


def _banded_weights(w_oihw, W, dtype=jnp.bfloat16):
    """OIHW (Cout, Cin, 3, 3) -> (3, W*Cin, W*Cout) banded matmul weights.

    B[kh, (w+kw-1)*Cin + ci, w*Cout + co] = w[co, ci, kh, kw]; taps with w+kw-1 outside
    [0, W) are dropped, which implements the W-direction zero padding.
    """
    Cout, Cin, KH, KW = w_oihw.shape
    w_idx = jnp.arange(W)
    ci_idx = jnp.arange(Cin)
    co_idx = jnp.arange(Cout)
    bands = []
    for kh in range(KH):
        B = jnp.zeros((W * Cin, W * Cout), jnp.float32)
        for kw in range(KW):
            wi = w_idx + (kw - 1)
            valid = (wi >= 0) & (wi < W)
            wi_c = jnp.clip(wi, 0, W - 1)
            rows = wi_c[:, None] * Cin + ci_idx[None, :]            # (W, Cin)
            cols = w_idx[:, None] * Cout + co_idx[None, :]          # (W, Cout)
            blk = w_oihw[:, :, kh, kw].T                            # (Cin, Cout)
            vals = jnp.where(valid[:, None, None], blk[None, :, :], 0.0)
            B = B.at[rows[:, :, None], cols[:, None, :]].add(vals)
        bands.append(B)
    return jnp.stack(bands, axis=0).astype(dtype)


def _double_conv_kernel(xp_ref, w1_ref, sc1_ref, sh1_ref,
                        w2_ref, sc2_ref, sh2_ref, o_ref, *, H, WCout):
    # xp_ref : (H+2, W*Cin)        bf16, H zero-padded, W/channel flattened on lanes
    # w1_ref : (3, W*Cin, W*Cout)  bf16 banded conv1 weights (one per kh tap)
    # w2_ref : (3, W*Cout, W*Cout) bf16 banded conv2 weights
    # sc/sh  : (1, W*Cout)         f32 folded BN scale / shift (tiled per lane)
    # o_ref  : (H, W*Cout)         f32, lane-dense output slab

    # ---- conv1: 3 row-shifted MXU matmuls (K = W*Cin) ----
    acc1 = jnp.dot(xp_ref[0:H, :], w1_ref[0], preferred_element_type=jnp.float32)
    acc1 += jnp.dot(xp_ref[1:H + 1, :], w1_ref[1], preferred_element_type=jnp.float32)
    acc1 += jnp.dot(xp_ref[2:H + 2, :], w1_ref[2], preferred_element_type=jnp.float32)
    y1 = jnp.maximum(acc1 * sc1_ref[...] + sh1_ref[...], 0.0)        # BN + ReLU in f32

    # zero-row pad the intermediate as a VALUE (no VMEM store->load round trip)
    zrow = jnp.zeros((1, WCout), jnp.float32)
    y1p = jnp.concatenate([zrow, y1, zrow], axis=0).astype(jnp.bfloat16)  # (H+2, W*Cout)

    # ---- conv2: 3 row-shifted MXU matmuls (K = W*Cout) ----
    acc2 = jnp.dot(y1p[0:H, :], w2_ref[0], preferred_element_type=jnp.float32)
    acc2 += jnp.dot(y1p[1:H + 1, :], w2_ref[1], preferred_element_type=jnp.float32)
    acc2 += jnp.dot(y1p[2:H + 2, :], w2_ref[2], preferred_element_type=jnp.float32)
    y2 = jnp.maximum(acc2 * sc2_ref[...] + sh2_ref[...], 0.0)        # BN + ReLU in f32

    o_ref[...] = y2.astype(o_ref.dtype)


def double_conv_pallas(x_nchw, params):
    """x_nchw: (N, Cin, H, W) float32. Returns (N, Cout, H, W) float32."""
    N, Cin, H, W = x_nchw.shape
    w1 = params["w1"]            # (Cout, Cin, 3, 3)  PyTorch OIHW
    w2 = params["w2"]            # (Cout, Cout, 3, 3)
    Cout = w1.shape[0]
    WCin, WCout = W * Cin, W * Cout

    # fold eval-mode BatchNorm into per-channel scale/shift, tiled over the W-flat lanes
    def fold_bn(gamma, beta, mean, var, eps=1e-5):
        scale = gamma / jnp.sqrt(var + eps)
        shift = beta - mean * scale
        return (jnp.tile(scale, W).reshape(1, WCout),
                jnp.tile(shift, W).reshape(1, WCout))

    sc1, sh1 = fold_bn(params["g1"], params["b1"], params["m1"], params["v1"])
    sc2, sh2 = fold_bn(params["g2"], params["b2"], params["m2"], params["v2"])

    # banded bf16 weights (encode kw taps + W-direction padding)
    w1b = _banded_weights(w1, W)          # (3, W*Cin,  W*Cout)
    w2b = _banded_weights(w2, W)          # (3, W*Cout, W*Cout)

    # NCHW -> (N, H, W*Cin), pad only H (W padding lives in the banded weights),
    # cast activations to bf16 to halve DMA bytes and feed the MXU natively.
    x_flat = jnp.transpose(x_nchw, (0, 2, 3, 1)).reshape(N, H, WCin)
    x_pad = jnp.pad(x_flat, ((0, 0), (1, 1), (0, 0))).astype(jnp.bfloat16)

    kernel = functools.partial(_double_conv_kernel, H=H, WCout=WCout)

    flops = N * 2 * 3 * H * (WCin * WCout + WCout * WCout)
    bytes_accessed = (x_pad.size * 2 + w1b.size * 2 + w2b.size * 2
                      + 4 * 4 * WCout + N * H * WCout * 4)

    out_flat = pl.pallas_call(
        kernel,
        out_shape=jax.ShapeDtypeStruct((N, H, WCout), jnp.float32),
        grid_spec=pltpu.PrefetchScalarGridSpec(
            num_scalar_prefetch=0,
            grid=(N,),
            in_specs=[
                pl.BlockSpec((None, H + 2, WCin), lambda n: (n, 0, 0)),
                pl.BlockSpec((3, WCin, WCout), lambda n: (0, 0, 0)),
                pl.BlockSpec((1, WCout), lambda n: (0, 0)),
                pl.BlockSpec((1, WCout), lambda n: (0, 0)),
                pl.BlockSpec((3, WCout, WCout), lambda n: (0, 0, 0)),
                pl.BlockSpec((1, WCout), lambda n: (0, 0)),
                pl.BlockSpec((1, WCout), lambda n: (0, 0)),
            ],
            out_specs=pl.BlockSpec((None, H, WCout), lambda n: (n, 0, 0)),
        ),
        compiler_params=pltpu.CompilerParams(
            dimension_semantics=("parallel",)),
        cost_estimate=pl.CostEstimate(
            flops=flops, transcendentals=0, bytes_accessed=bytes_accessed),
    )(x_pad, w1b, sc1, sh1, w2b, sc2, sh2)

    out = out_flat.reshape(N, H, W, Cout)
    return jnp.transpose(out, (0, 3, 1, 2))  # NHWC(flat) -> NCHW


def _reference(x_nchw, params):
    """Pure-JAX f32 reference (NCHW conv, eval-mode BN, ReLU) for validation."""
    def block(x, w, g, b, m, v, eps=1e-5):
        y = lax.conv_general_dilated(
            x, w, window_strides=(1, 1), padding=((1, 1), (1, 1)),
            dimension_numbers=("NCHW", "OIHW", "NCHW"))
        scale = (g / jnp.sqrt(v + eps)).reshape(1, -1, 1, 1)
        shift = (b - m * g / jnp.sqrt(v + eps)).reshape(1, -1, 1, 1)
        return jnp.maximum(y * scale + shift, 0.0)

    y = block(x_nchw, params["w1"], params["g1"], params["b1"],
              params["m1"], params["v1"])
    y = block(y, params["w2"], params["g2"], params["b2"],
              params["m2"], params["v2"])
    return y


if __name__ == "__main__":
    key = jax.random.PRNGKey(0)
    N, Cin, Cout, H, W = 2, 4, 8, 16, 16

    ks = jax.random.split(key, 8)
    params = {
        "w1": jax.random.normal(ks[0], (Cout, Cin, 3, 3), jnp.float32) * 0.2,
        "w2": jax.random.normal(ks[1], (Cout, Cout, 3, 3), jnp.float32) * 0.2,
        "g1": 1.0 + 0.1 * jax.random.normal(ks[2], (Cout,), jnp.float32),
        "b1": 0.1 * jax.random.normal(ks[3], (Cout,), jnp.float32),
        "m1": 0.05 * jax.random.normal(ks[4], (Cout,), jnp.float32),
        "v1": 1.0 + 0.1 * jax.random.uniform(ks[5], (Cout,), jnp.float32),
        "g2": 1.0 + 0.1 * jax.random.normal(ks[6], (Cout,), jnp.float32),
        "b2": 0.1 * jax.random.normal(ks[7], (Cout,), jnp.float32),
        "m2": jnp.zeros((Cout,), jnp.float32),
        "v2": jnp.ones((Cout,), jnp.float32),
    }

    x = jax.random.normal(jax.random.PRNGKey(42), (N, Cin, H, W), jnp.float32)

    out = double_conv_pallas(x, params)
    out = jax.block_until_ready(out)

    ref = jax.block_until_ready(_reference(x, params))
    assert out.shape == (N, Cout, H, W)
    # bf16 MXU operands with f32 accumulation -> relaxed tolerance vs the f32 reference
    # (as flagged in the performance review).
    assert jnp.allclose(out, ref, rtol=2e-2, atol=5e-2), "mismatch vs reference"

    print("KERNEL_OK")
</pallas_src>

<mosaic_0001>
module attributes {stable_mosaic.version = 11 : i64} {
  func.func @_double_conv_kernel(%arg0: i32, %arg1: memref<1x18x64xbf16, #tpu.memory_space<vmem>>, %arg2: memref<3x64x128xbf16, #tpu.memory_space<vmem>>, %arg3: memref<1x128xf32, #tpu.memory_space<vmem>>, %arg4: memref<1x128xf32, #tpu.memory_space<vmem>>, %arg5: memref<3x128x128xbf16, #tpu.memory_space<vmem>>, %arg6: memref<1x128xf32, #tpu.memory_space<vmem>>, %arg7: memref<1x128xf32, #tpu.memory_space<vmem>>, %arg8: memref<1x16x128xf32, #tpu.memory_space<vmem>>) attributes {dimension_semantics = [#tpu.dimension_semantics<parallel>], iteration_bounds = array<i64: 2>, scalar_prefetch = 0 : i64, scratch_operands = 0 : i64, tpu.core_type = #tpu.core_type<tc>, window_params = [{transform_indices = @transform_0, window_bounds = array<i64: 1, 18, 64>}, {pipeline_mode = #tpu.pipeline_mode<synchronous>, transform_indices = @transform_1, window_bounds = array<i64: 3, 64, 128>}, {pipeline_mode = #tpu.pipeline_mode<synchronous>, transform_indices = @transform_2, window_bounds = array<i64: 1, 128>}, {pipeline_mode = #tpu.pipeline_mode<synchronous>, transform_indices = @transform_3, window_bounds = array<i64: 1, 128>}, {pipeline_mode = #tpu.pipeline_mode<synchronous>, transform_indices = @transform_4, window_bounds = array<i64: 3, 128, 128>}, {pipeline_mode = #tpu.pipeline_mode<synchronous>, transform_indices = @transform_5, window_bounds = array<i64: 1, 128>}, {pipeline_mode = #tpu.pipeline_mode<synchronous>, transform_indices = @transform_6, window_bounds = array<i64: 1, 128>}, {transform_indices = @transform_7, window_bounds = array<i64: 1, 16, 128>}]} {
    %c0 = arith.constant 0 : index
    %c0_0 = arith.constant 0 : index
    %c0_1 = arith.constant 0 : index
    %0 = vector.load %arg1[%c0, %c0_0, %c0_1] : memref<1x18x64xbf16, #tpu.memory_space<vmem>>, vector<1x16x64xbf16>
    %1 = vector.shape_cast %0 : vector<1x16x64xbf16> to vector<16x64xbf16>
    %c0_2 = arith.constant 0 : index
    %c0_3 = arith.constant 0 : index
    %c0_4 = arith.constant 0 : index
    %2 = vector.load %arg2[%c0_2, %c0_3, %c0_4] : memref<3x64x128xbf16, #tpu.memory_space<vmem>>, vector<1x64x128xbf16>
    %3 = vector.shape_cast %2 : vector<1x64x128xbf16> to vector<64x128xbf16>
    %cst = arith.constant dense<0.000000e+00> : vector<16x128xf32>
    %4 = tpu.matmul %1, %3, %cst {dimension_numbers = #tpu.dot_dimension_numbers<[1], [0], [0], [1], [0, 0, 1, 1], [], []>} : vector<16x64xbf16>, vector<64x128xbf16>, vector<16x128xf32> -> vector<16x128xf32>
    %c0_5 = arith.constant 0 : index
    %c1 = arith.constant 1 : index
    %c0_6 = arith.constant 0 : index
    %5 = vector.load %arg1[%c0_5, %c1, %c0_6] : memref<1x18x64xbf16, #tpu.memory_space<vmem>>, vector<1x16x64xbf16>
    %6 = vector.shape_cast %5 : vector<1x16x64xbf16> to vector<16x64xbf16>
    %c1_7 = arith.constant 1 : index
    %c0_8 = arith.constant 0 : index
    %c0_9 = arith.constant 0 : index
    %7 = vector.load %arg2[%c1_7, %c0_8, %c0_9] : memref<3x64x128xbf16, #tpu.memory_space<vmem>>, vector<1x64x128xbf16>
    %8 = vector.shape_cast %7 : vector<1x64x128xbf16> to vector<64x128xbf16>
    %cst_10 = arith.constant dense<0.000000e+00> : vector<16x128xf32>
    %9 = tpu.matmul %6, %8, %cst_10 {dimension_numbers = #tpu.dot_dimension_numbers<[1], [0], [0], [1], [0, 0, 1, 1], [], []>} : vector<16x64xbf16>, vector<64x128xbf16>, vector<16x128xf32> -> vector<16x128xf32>
    %10 = arith.addf %4, %9 : vector<16x128xf32>
    %c0_11 = arith.constant 0 : index
    %c2 = arith.constant 2 : index
    %c0_12 = arith.constant 0 : index
    %11 = vector.load %arg1[%c0_11, %c2, %c0_12] : memref<1x18x64xbf16, #tpu.memory_space<vmem>>, vector<1x16x64xbf16>
    %12 = vector.shape_cast %11 : vector<1x16x64xbf16> to vector<16x64xbf16>
    %c2_13 = arith.constant 2 : index
    %c0_14 = arith.constant 0 : index
    %c0_15 = arith.constant 0 : index
    %13 = vector.load %arg2[%c2_13, %c0_14, %c0_15] : memref<3x64x128xbf16, #tpu.memory_space<vmem>>, vector<1x64x128xbf16>
    %14 = vector.shape_cast %13 : vector<1x64x128xbf16> to vector<64x128xbf16>
    %cst_16 = arith.constant dense<0.000000e+00> : vector<16x128xf32>
    %15 = tpu.matmul %12, %14, %cst_16 {dimension_numbers = #tpu.dot_dimension_numbers<[1], [0], [0], [1], [0, 0, 1, 1], [], []>} : vector<16x64xbf16>, vector<64x128xbf16>, vector<16x128xf32> -> vector<16x128xf32>
    %16 = arith.addf %10, %15 : vector<16x128xf32>
    %c0_17 = arith.constant 0 : index
    %c0_18 = arith.constant 0 : index
    %17 = vector.load %arg3[%c0_17, %c0_18] : memref<1x128xf32, #tpu.memory_space<vmem>>, vector<1x128xf32>
    %18 = vector.broadcast %17 : vector<1x128xf32> to vector<16x128xf32>
    %19 = arith.mulf %16, %18 : vector<16x128xf32>
    %c0_19 = arith.constant 0 : index
    %c0_20 = arith.constant 0 : index
    %20 = vector.load %arg4[%c0_19, %c0_20] : memref<1x128xf32, #tpu.memory_space<vmem>>, vector<1x128xf32>
    %21 = vector.broadcast %20 : vector<1x128xf32> to vector<16x128xf32>
    %22 = arith.addf %19, %21 : vector<16x128xf32>
    %cst_21 = arith.constant 0.000000e+00 : f32
    %23 = vector.broadcast %cst_21 : f32 to vector<16x128xf32>
    %24 = arith.maximumf %22, %23 : vector<16x128xf32>
    %cst_22 = arith.constant 0.000000e+00 : f32
    %25 = vector.broadcast %cst_22 : f32 to vector<1x128xf32>
    %26 = tpu.concatenate %25, %24, %25 in 0 : vector<1x128xf32>, vector<16x128xf32>, vector<1x128xf32> -> vector<18x128xf32>
    %27 = arith.truncf %26 : vector<18x128xf32> to vector<18x128xbf16>
    %28 = vector.extract_strided_slice %27 {offsets = [0, 0], sizes = [16, 128], strides = [1, 1]} : vector<18x128xbf16> to vector<16x128xbf16>
    %c0_23 = arith.constant 0 : index
    %c0_24 = arith.constant 0 : index
    %c0_25 = arith.constant 0 : index
    %29 = vector.load %arg5[%c0_23, %c0_24, %c0_25] : memref<3x128x128xbf16, #tpu.memory_space<vmem>>, vector<1x128x128xbf16>
    %30 = vector.shape_cast %29 : vector<1x128x128xbf16> to vector<128x128xbf16>
    %cst_26 = arith.constant dense<0.000000e+00> : vector<16x128xf32>
    %31 = tpu.matmul %28, %30, %cst_26 {dimension_numbers = #tpu.dot_dimension_numbers<[1], [0], [0], [1], [0, 0, 1, 1], [], []>} : vector<16x128xbf16>, vector<128x128xbf16>, vector<16x128xf32> -> vector<16x128xf32>
    %32 = vector.extract_strided_slice %27 {offsets = [1, 0], sizes = [16, 128], strides = [1, 1]} : vector<18x128xbf16> to vector<16x128xbf16>
    %c1_27 = arith.constant 1 : index
    %c0_28 = arith.constant 0 : index
    %c0_29 = arith.constant 0 : index
    %33 = vector.load %arg5[%c1_27, %c0_28, %c0_29] : memref<3x128x128xbf16, #tpu.memory_space<vmem>>, vector<1x128x128xbf16>
    %34 = vector.shape_cast %33 : vector<1x128x128xbf16> to vector<128x128xbf16>
    %cst_30 = arith.constant dense<0.000000e+00> : vector<16x128xf32>
    %35 = tpu.matmul %32, %34, %cst_30 {dimension_numbers = #tpu.dot_dimension_numbers<[1], [0], [0], [1], [0, 0, 1, 1], [], []>} : vector<16x128xbf16>, vector<128x128xbf16>, vector<16x128xf32> -> vector<16x128xf32>
    %36 = arith.addf %31, %35 : vector<16x128xf32>
    %37 = vector.extract_strided_slice %27 {offsets = [2, 0], sizes = [16, 128], strides = [1, 1]} : vector<18x128xbf16> to vector<16x128xbf16>
    %c2_31 = arith.constant 2 : index
    %c0_32 = arith.constant 0 : index
    %c0_33 = arith.constant 0 : index
    %38 = vector.load %arg5[%c2_31, %c0_32, %c0_33] : memref<3x128x128xbf16, #tpu.memory_space<vmem>>, vector<1x128x128xbf16>
    %39 = vector.shape_cast %38 : vector<1x128x128xbf16> to vector<128x128xbf16>
    %cst_34 = arith.constant dense<0.000000e+00> : vector<16x128xf32>
    %40 = tpu.matmul %37, %39, %cst_34 {dimension_numbers = #tpu.dot_dimension_numbers<[1], [0], [0], [1], [0, 0, 1, 1], [], []>} : vector<16x128xbf16>, vector<128x128xbf16>, vector<16x128xf32> -> vector<16x128xf32>
    %41 = arith.addf %36, %40 : vector<16x128xf32>
    %c0_35 = arith.constant 0 : index
    %c0_36 = arith.constant 0 : index
    %42 = vector.load %arg6[%c0_35, %c0_36] : memref<1x128xf32, #tpu.memory_space<vmem>>, vector<1x128xf32>
    %43 = vector.broadcast %42 : vector<1x128xf32> to vector<16x128xf32>
    %44 = arith.mulf %41, %43 : vector<16x128xf32>
    %c0_37 = arith.constant 0 : index
    %c0_38 = arith.constant 0 : index
    %45 = vector.load %arg7[%c0_37, %c0_38] : memref<1x128xf32, #tpu.memory_space<vmem>>, vector<1x128xf32>
    %46 = vector.broadcast %45 : vector<1x128xf32> to vector<16x128xf32>
    %47 = arith.addf %44, %46 : vector<16x128xf32>
    %cst_39 = arith.constant 0.000000e+00 : f32
    %48 = vector.broadcast %cst_39 : f32 to vector<16x128xf32>
    %49 = arith.maximumf %47, %48 : vector<16x128xf32>
    %c0_40 = arith.constant 0 : index
    %c0_41 = arith.constant 0 : index
    %c0_42 = arith.constant 0 : index
    %50 = vector.load %arg8[%c0_40, %c0_41, %c0_42] : memref<1x16x128xf32, #tpu.memory_space<vmem>>, vector<1x16x128xf32>
    %51 = vector.shape_cast %50 : vector<1x16x128xf32> to vector<16x128xf32>
    %52 = vector.shape_cast %49 : vector<16x128xf32> to vector<1x16x128xf32>
    tpu.vector_store %arg8[%c0_40, %c0_41, %c0_42], %52 {strides = array<i32>} : memref<1x16x128xf32, #tpu.memory_space<vmem>>, vector<1x16x128xf32>,
    return
  }
  func.func @transform_0(%arg0: i32) -> (i32, i32, i32) {
    %c0_i32 = arith.constant 0 : i32
    %c0_i32_0 = arith.constant 0 : i32
    %c0_i32_1 = arith.constant 0 : i32
    return %arg0, %c0_i32, %c0_i32_0 : i32, i32, i32
  }
  func.func @transform_1(%arg0: i32) -> (i32, i32, i32) {
    %c0_i32 = arith.constant 0 : i32
    %c0_i32_0 = arith.constant 0 : i32
    %c0_i32_1 = arith.constant 0 : i32
    %c0_i32_2 = arith.constant 0 : i32
    return %c0_i32, %c0_i32_0, %c0_i32_1 : i32, i32, i32
  }
  func.func @transform_2(%arg0: i32) -> (i32, i32) {
    %c0_i32 = arith.constant 0 : i32
    %c0_i32_0 = arith.constant 0 : i32
    %c0_i32_1 = arith.constant 0 : i32
    return %c0_i32, %c0_i32_0 : i32, i32
  }
  func.func @transform_3(%arg0: i32) -> (i32, i32) {
    %c0_i32 = arith.constant 0 : i32
    %c0_i32_0 = arith.constant 0 : i32
    %c0_i32_1 = arith.constant 0 : i32
    return %c0_i32, %c0_i32_0 : i32, i32
  }
  func.func @transform_4(%arg0: i32) -> (i32, i32, i32) {
    %c0_i32 = arith.constant 0 : i32
    %c0_i32_0 = arith.constant 0 : i32
    %c0_i32_1 = arith.constant 0 : i32
    %c0_i32_2 = arith.constant 0 : i32
    return %c0_i32, %c0_i32_0, %c0_i32_1 : i32, i32, i32
  }
  func.func @transform_5(%arg0: i32) -> (i32, i32) {
    %c0_i32 = arith.constant 0 : i32
    %c0_i32_0 = arith.constant 0 : i32
    %c0_i32_1 = arith.constant 0 : i32
    return %c0_i32, %c0_i32_0 : i32, i32
  }
  func.func @transform_6(%arg0: i32) -> (i32, i32) {
    %c0_i32 = arith.constant 0 : i32
    %c0_i32_0 = arith.constant 0 : i32
    %c0_i32_1 = arith.constant 0 : i32
    return %c0_i32, %c0_i32_0 : i32, i32
  }
  func.func @transform_7(%arg0: i32) -> (i32, i32, i32) {
    %c0_i32 = arith.constant 0 : i32
    %c0_i32_0 = arith.constant 0 : i32
    %c0_i32_1 = arith.constant 0 : i32
    return %arg0, %c0_i32, %c0_i32_0 : i32, i32, i32
  }
}

</mosaic_0001>

<bundles_post_ra>
// kernel: tpu_custom_call.1
= control target key start
LH: loop header
LB: loop body
LE: loop exit
PB: predicated region body
PF: predicated region fallthrough
CT: control target
= control target key end

     0   :  { %12 = vsyncpa [#allocation3], 0  ;;  %s1491_s0 = inlined_call_operand.vmem [shape: bf16[2,18,64], index: 0, kind: input, shape index: {}]   ;;  %s1492_s1 = inlined_call_operand.hbm [shape: bf16[3,64,128], index: 1, kind: input, shape index: {}]   ;;  %s1493_s2 = inlined_call_operand.vmem [shape: f32[1,128], index: 2, kind: input, shape index: {}]   ;;  %s1494_s3 = inlined_call_operand.vmem [shape: f32[1,128], index: 3, kind: input, shape index: {}]   ;;  %s1495_s4 = inlined_call_operand.hbm [shape: bf16[3,128,128], index: 4, kind: input, shape index: {}]   ;;  %s1496_s5 = inlined_call_operand.vmem [shape: f32[1,128], index: 5, kind: input, shape index: {}]   ;;  %s1497_s6 = inlined_call_operand.vmem [shape: f32[1,128], index: 6, kind: input, shape index: {}]   ;;  %s1498_s7 = inlined_call_operand.hbm [shape: f32[2,16,128], index: 7, kind: output, shape index: {}]  }
   0x1   :  { %13 = vsyncpa [#allocation6], 0 }
   0x2   :  { %14 = vsyncpa [#allocation4], 0 }
   0x3   :  { %16 = vsyncpa [#allocation4 + $0x1], 0  ;;  %s1356_s24 = smov 0   ;;  %s1358_s25 = smov 0  }
   0x4   :  { %s1360_s26 = smov 0   ;;  %s1362_s27 = smov 0  }
   0x5 LB: > { %s1377_s28 = sadd.s32 4294967295, %s1308_s27   ;;  %s903_s29 = sadd.s32 4294967294, %s1308_s27   ;;  %s1308_s27 = sphi %s1362_s27, %s1505_s27   ;;  %s1304_s26 = sphi %s1360_s26, %s1504_s26   ;;  %s1300_s25 = sphi %s1358_s25, %s1503_s25   ;;  %s1296_s24 = sphi %s1356_s24, %s1502_s24  }
   0x6   : > { %s1381_s30 = sadd.s32 1, %s1308_s27   ;;  %s181_s8 = sadd.s32 1, %s1304_s26 }
   0x7   : > { %s178_s9 = ssub.s32 %s1308_s27, %s1381_s30  ;;  %p191_p0 = scmp.ne.s32.totalorder %s1304_s26, %s1300_s25 }
   0x8   : > { %p179_p1 = scmp.eq.s32.totalorder %s178_s9, 0  ;;  %p192_p2 = scmp.eq.s32.totalorder %s1377_s28, 1 }
   0x9   : > { %p197_p3 = scmp.ne.s32.totalorder %s1300_s25, %s1296_s24  ;;  %p198_p4 = scmp.eq.s32.totalorder %s903_s29, 1 }
   0xa   : > { %s1392_s10 = scalar_select %p179_p1, %s1304_s26, %s181_s8  }
   0xb   : > { %p1394_p5 = por %p192_p2, %p191_p0  ;;  %p1398_p6 = por %p198_p4, %p197_p3 }
   0xc   : > { %p904_p7 = scmp.ge.s32.totalorder %s1308_s27, 1  ;;  %p205_p8 = scmp.lt.s32.totalorder %s1308_s27, 3 }
   0xd   : > { %p1131_p9 = scmp.eq.s32.totalorder %s1377_s28, 0  ;;  %s216_s16 = sshll.u32 %s1492_s1, 4  ;;  %s217_s16 = int_to_ptr.hbm [resolvable:$true] %s216_s16 }
   0xe   : > { %p1405_p10 = pnand %p904_p7, %p205_p8  ;;  %s1310_s17 = smov [#allocation2]  }
   0xf   : > { %s218_s18 = sshll.u32 %s1310_s17, 4  ;;  %s236_s21 = sshll.u32 %s1495_s4, 4  ;;  %s219_s18 = int_to_ptr.vmem [resolvable:$true] %s218_s18  ;;  %s237_s21 = int_to_ptr.hbm [resolvable:$true] %s236_s21 }
  0x10   : > { %p1120_p11 = pneg %p1405_p10  ;;  %s1311_s22 = smov 64  }
  0x11   : > { %s1312_s23 = smov 4   ;;  %s1313_s29 = smov [#allocation5]  }
  0x12   : > { %p1121_p12 = pnand %p1131_p9, %p1120_p11  ;;  %s238_s8 = sshll.u32 %s1313_s29, 4  ;;  %s239_s8 = int_to_ptr.vmem [resolvable:$true] %s238_s8 }
  0x13   : > { %268 = sbr.rel (%p1405_p10) target bundleno = 379 (0x17b), region = 48 }
  0x14   : > { %1123 = dma.hbm_to_vmem [thread:$0]  (!%p1121_p12), %s217_s16, 1536, %s219_s18, [#allocation3], %s1311_s22, %s1311_s22, %s1312_s23  }
  0x15   : > { %1126 = dma.hbm_to_vmem [thread:$0]  (!%p1121_p12), %s237_s21, 3072, %s239_s8, [#allocation6], %s1311_s22, %s1311_s22, %s1312_s23  }
  0x18   : > { %1283 = dma.done.wait (%p1131_p9), [#allocation3], 1536  }
  0x19   : > { %1285 = vsyncadd (%p1131_p9), [#allocation3], 4294965760 }
  0x1a   : > { %1287 = dma.done.wait (%p1131_p9), [#allocation6], 3072  }
  0x1b   : > { %1289 = vsyncadd (%p1131_p9), [#allocation6], 4294964224  ;;  %p306_p13 = scmp.lt.s32.totalorder %s1377_s28, 1  ;;  %v1072_v0 = vld [vmem:[#allocation2 + $0x38] sm:$0xff]  ;;  %v1071_v2 = vld [vmem:[#allocation2 + $0x30] sm:$0xff]  ;;  %vm377_vm1 = vcmask 523264  }
  0x1c   : > { %v1068_v1 = vld [vmem:[#allocation2 + $0x18] sm:$0xff]  ;;  %385 = vmatpush.bf16.msra.mxu2 %v1072_v0  ;;  %v1067_v3 = vld [vmem:[#allocation2 + $0x10] sm:$0xff]  ;;  %v1070_v8 = vld [vmem:[#allocation2 + $0x28] sm:$0xff]  ;;  %vm340_vm0 = vsmask.f32 7424  ;;  %vm448_vm2 = vcmask 1046528  }
  0x1d   : > { %s307_s9 = scalar_select %p306_p13, %s1377_s28, 1  ;;  %425 = vmatpush.bf16.msra.mxu1 %v1068_v1  ;;  %v1066_v9 = vld [vmem:[#allocation2 + $0x8] sm:$0xff]  ;;  %v1069_v14 = vld [vmem:[#allocation2 + $0x20] sm:$0xff]  ;;  %v1076_v18 = vld [vmem:[#allocation2 + $0x58] sm:$0xff]  ;;  %vm511_vm3 = vcmask 1040384  }
  0x1e   : > { %v1065_v17 = vld [vmem:[#allocation2] sm:$0xff]  ;;  %v1075_v20 = vld [vmem:[#allocation2 + $0x50] sm:$0xff]  ;;  %v1074_v21 = vld [vmem:[#allocation2 + $0x48] sm:$0xff]  ;;  %s303_s23 = sand.u32 1, %s1300_s25   ;;  %s1258_s8 = scalar_lea.hbm %s1498_s7, 32 }
  0x1f   : > { %s1109_s14 = smul.u32 12, %s307_s9  ;;  %v1073_v25 = vld [vmem:[#allocation2 + $0x40] sm:$0xff]  ;;  %v1084_v29 = vld [vmem:[#allocation5 + $0x38] sm:$0xff]  ;;  %v1083_v31 = vld [vmem:[#allocation5 + $0x30] sm:$0xff]  ;;  %s911_s9 = sshll.u32 %s303_s23, 4 }
  0x20   : > { %386 = vmatpush.bf16.msra.mxu2 %v1071_v2  ;;  %v1100_v30 = vld [vmem:[#allocation5 + $0xb8] sm:$0xff]  ;;  %688 = vmatpush.bf16.msra.mxu0 %v1084_v29  ;;  %v1099_v33 = vld [vmem:[#allocation5 + $0xb0] sm:$0xff]  ;;  %v1082_v34 = vld [vmem:[#allocation5 + $0x28] sm:$0xff]  ;;  %s305_s17 = scalar_lea.vmem [#allocation7], %s911_s9 }
  0x21   : > { %s1434_s16 = scalar_lea.vmem %s1491_s0, %s1109_s14  ;;  %426 = vmatpush.bf16.msra.mxu1 %v1067_v3  ;;  %v1092_v32 = vld [vmem:[#allocation5 + $0x78] sm:$0xff]  ;;  %v1091_v35 = vld [vmem:[#allocation5 + $0x70] sm:$0xff]  ;;  %v1098_v36 = vld [vmem:[#allocation5 + $0xa8] sm:$0xff]  ;;  %s1101_s14 = sshll.u32 %s1377_s28, 4 }
  0x22   : > { %v1103_v4 = vld [vmem:[%s1434_s16] sm:$0xff]   ;;  %v322_v5 = vld [vmem:[%s1434_s16 + $0x8] sm:$0x1]  ;;  %625 = vmatpush.bf16.msra.mxu3 %v1092_v32  ;;  %v1080_v40 = vld [vmem:[#allocation5 + $0x18] sm:$0xff]  ;;  %s816_s18 = sshll.u32 %s305_s17, 4  ;;  %s804_s28 = scalar_lea.sflag [#allocation4], %s303_s23  ;;  %s817_s18 = int_to_ptr.vmem [resolvable:$true] %s816_s18 }
  0x23   : > { %v337_v6 = vunpack.c.l.b16 %v322_v5  ;;  %v344_v7 = vshll.u32 %v1103_v4, 16  ;;  %v342_v11 = vshrl.u32 %v1103_v4, 16  ;;  %v1106_v22 = vld [vmem:[%s1434_s16] sm:$0xf0]  ;;  %v1107_v23 = vld [vmem:[%s1434_s16] sm:$0xe]  ;;  %s815_s16 = scalar_lea.hbm %s1498_s7, %s1101_s14 }
  0x24   : > { %387 = vmatpush.bf16.msra.mxu2 %v1070_v8  ;;  %v1108_v24 = vor.u32 %v1107_v23, %v1106_v22  ;;  %689 = vmatpush.bf16.msra.mxu0 %v1083_v31  ;;  %v1081_v37 = vld [vmem:[#allocation5 + $0x20] sm:$0xff]  ;;  %v1090_v38 = vld [vmem:[#allocation5 + $0x68] sm:$0xff]  ;;  %v1096_v42 = vld [vmem:[#allocation5 + $0x98] sm:$0xff]  ;;  %s818_s19 = sshll.u32 %s815_s16, 4  ;;  %s819_s19 = int_to_ptr.hbm [resolvable:$true] %s818_s19 }
  0x25   : > { %v339_v10 = vpack.c.b16 %v337_v6, %v337_v6  ;;  %v346_v12 = vrot.slane %v344_v7, 1  ;;  %427 = vmatpush.bf16.msra.mxu1 %v1066_v9  ;;  %v1097_v39 = vld [vmem:[#allocation5 + $0xa0] sm:$0xff]  ;;  %v1079_v43 = vld [vmem:[#allocation5 + $0x10] sm:$0xff]  ;;  %v1088_v45 = vld [vmem:[#allocation5 + $0x58] sm:$0xff]  ;;  %s1252_s20 = sshra.s32 %s819_s19, 4  ;;  %s1253_s20 = int_to_ptr.hbm [resolvable:$true] %s1252_s20 }
  0x26   : > { %v449_v26 = vrot.slane %v1108_v24, 1  ;;  %626 = vmatpush.bf16.msra.mxu3 %v1091_v35  ;;  %v1089_v41 = vld [vmem:[#allocation5 + $0x60] sm:$0xff]  ;;  %v1095_v46 = vld [vmem:[#allocation5 + $0x90] sm:$0xff]  ;;  %v1078_v47 = vld [vmem:[#allocation5 + $0x8] sm:$0xff]  ;;  %s1254_s21 = scalar_lea.hbm %s1253_s20, 16  ;;  %p1259_p3 = scmp.lt.s32.totalorder %s1253_s20, %s1498_s7 }
  0x27   : > { %v349_v13 = vshll.u32 %v339_v10, 16  ;;  %v347_v15 = vor.u32 %v346_v12, %v342_v11  ;;  %v450_v27 = vrot.slane %v339_v10, 1  ;;  %v1087_v48 = vld [vmem:[#allocation5 + $0x50] sm:$0xff]  ;;  %v1094_v49 = vld [vmem:[#allocation5 + $0x88] sm:$0xff]  ;;  %v1077_v50 = vld [vmem:[#allocation5] sm:$0xff]  ;;  %p1255_p0 = scmp.ne.s32.totalorder %s1253_s20, %s1254_s21  ;;  %p1260_p4 = scmp.lt.s32.totalorder %s1258_s8, %s1254_s21 }
  0x28   : > { %388 = vmatpush.bf16.msra.mxu2 %v1069_v14  ;;  %690 = vmatpush.bf16.msra.mxu0 %v1082_v34  ;;  %v1086_v51 = vld [vmem:[#allocation5 + $0x48] sm:$0xff]  ;;  %v1093_v53 = vld [vmem:[#allocation5 + $0x80] sm:$0xff] }
  0x29   : > { %v351_v16 = vrot.slane %v349_v13, 1  ;;  %428 = vmatpush.bf16.msra.mxu1 %v1065_v17  ;;  %v451_v28 = vsel %vm448_vm2, %v449_v26, %v450_v27  ;;  %v1085_v55 = vld [vmem:[#allocation5 + $0x40] sm:$0xff]  ;;  %p1256_p1 = pnand %p1255_p0, %p1394_p5  ;;  %p1261_p7 = por %p1260_p4, %p1259_p3 }
  0x2a   : > { %627 = vmatpush.bf16.msra.mxu3 %v1090_v38  ;;  %v1174_v57 = vld [vmem:[%s1493_s2] ss:$0 sm:$0xff] }
  0x2b   : > { %v352_v19 = vsel %vm340_vm0, %v347_v15, %v351_v16  ;;  %v1175_v60 = vld [vmem:[%s1494_s3] ss:$0 sm:$0xff]  ;;  %p1257_p2 = pneg %p1256_p1 }
  0x2c   : > { %483 = vmatpush.bf16.msrb.mxu2 %v1076_v18  ;;  %946 = vmatmul.msk.bf16.vlgmr.msra.gmra.mxu1 %vm377_vm1, %v1103_v4  ;;  %v1176_v34 = vld [vmem:[%s1496_s5] ss:$0 sm:$0xff] }
  0x2d   : > { %929 = vmatmul.msk.bf16.vlgmr.msra.gmra.mxu2 %vm377_vm1, %v352_v19  ;;  %771 = vmatpush.bf16.msrb.mxu1 %v1100_v30  ;;  %p1262_p8 = pnand %p1261_p7, %p1257_p2 }
  0x2e   : > { %691 = vmatpush.bf16.msra.mxu0 %v1081_v37  ;;  %628 = vmatpush.bf16.msra.mxu3 %v1089_v41 }
  0x30   : > { %484 = vmatpush.bf16.msrb.mxu2 %v1075_v20 }
  0x31   : > { %772 = vmatpush.bf16.msrb.mxu1 %v1099_v33 }
  0x32   : > { %692 = vmatpush.bf16.msra.mxu0 %v1080_v40  ;;  %629 = vmatpush.bf16.msra.mxu3 %v1088_v45 }
  0x34   : > { %485 = vmatpush.bf16.msrb.mxu2 %v1074_v21 }
  0x35   : > { %773 = vmatpush.bf16.msrb.mxu1 %v1098_v36  ;;  %v1177_v36 = vld [vmem:[%s1497_s6] ss:$0 sm:$0xff] }
  0x36   : > { %693 = vmatpush.bf16.msra.mxu0 %v1079_v43  ;;  %630 = vmatpush.bf16.msra.mxu3 %v1087_v48 }
  0x38   : > { %486 = vmatpush.bf16.msrb.mxu2 %v1073_v25 }
  0x39   : > { %774 = vmatpush.bf16.msrb.mxu1 %v1097_v39 }
  0x3a   : > { %694 = vmatpush.bf16.msra.mxu0 %v1078_v47  ;;  %631 = vmatpush.bf16.msra.mxu3 %v1086_v51 }
  0x3d   : > { %963 = vmatmul.msk.bf16.vlgmr.msrb.gmra.mxu2 %vm377_vm1, %v451_v28  ;;  %775 = vmatpush.bf16.msrb.mxu1 %v1096_v42 }
  0x3e   : > { %695 = vmatpush.bf16.msra.mxu0 %v1077_v50  ;;  %632 = vmatpush.bf16.msra.mxu3 %v1085_v55 }
  0x41   : > { %776 = vmatpush.bf16.msrb.mxu1 %v1095_v46 }
  0x45   : > { %777 = vmatpush.bf16.msrb.mxu1 %v1094_v49 }
  0x49   : > { %778 = vmatpush.bf16.msrb.mxu1 %v1093_v53 }
  0xa9   : > { %v430_v54 = vpop.f32.mrf.mxu1 }
  0xb0   : > { %v390_v44 = vpop.f32.mrf.mxu2 }
  0xb1   : > { %v431_v56 = vadd.f32 %v430_v54, %v390_v44  ;;  %v432_v62 = vpop.f32.mrf.mxu1 }
  0xb8   : > { %v392_v52 = vpop.f32.mrf.mxu2 }
  0xb9   : > { %v433_v0 = vadd.f32 %v432_v62, %v392_v52 }
  0xc0   : > { %v488_v58 = vpop.f32.mrf.mxu2 }
  0xc1   : > { %v493_v59 = vadd.f32 %v488_v58, %v431_v56 }
  0xc3   : > { %v499_v61 = vmul.f32 %v1174_v57, %v493_v59 }
  0xc5   : > { %v505_v63 = vadd.f32 %v1175_v60, %v499_v61 }
  0xc7   : > { %v507_v1 = vmax.f32 %v505_v63, 0.0 }
  0xc8   : > { %v490_v2 = vpop.f32.mrf.mxu2 }
  0xc9   : > { %v494_v3 = vadd.f32 %v490_v2, %v433_v0  ;;  %v512_v4 = vrot.slane %v507_v1, 7 }
  0xcb   : > { %v500_v5 = vmul.f32 %v1174_v57, %v494_v3  ;;  %v518_v7 = vsel %vm511_vm3, 0.0, %v512_v4 }
  0xcc   : > { %v520_v10 = vpack.c.bf16 %v518_v7, %v518_v7 }
  0xcd   : > { %v506_v6 = vadd.f32 %v1175_v60, %v500_v5 }
  0xce   : > { %v559_v15 = vunpack.c.l.b16 %v520_v10 }
  0xcf   : > { %v508_v8 = vmax.f32 %v506_v6, 0.0 }
  0xd1   : > { %v513_v9 = vrot.slane %v508_v8, 7 }
  0xd3   : > { %v514_v11 = vsel %vm511_vm3, %v512_v4, %v513_v9  ;;  %v519_v12 = vsel %vm511_vm3, %v513_v9, 0.0 }
  0xd4   : > { %v522_v13 = vpack.c.bf16 %v519_v12, %v519_v12  ;;  %v521_v14 = vpack.c.bf16 %v514_v11, %v514_v11 }
  0xd6   : > { %v561_v16 = vunpack.c.l.b16 %v522_v13  ;;  %v560_v17 = vunpack.c.l.b16 %v521_v14 }
  0xd8   : > { %v562_v18 = vpack.c.b16 %v560_v17, %v559_v15  ;;  %v563_v19 = vpack.c.b16 %v561_v16, %v561_v16 }
  0xda   : > { %696 = vmatmul.bf16.vlgmr.msra.gmra.mxu0 %v562_v18  ;;  %v719_v20 = vrot.slane %v562_v18, 1  ;;  %v720_v21 = vrot.slane %v563_v19, 1  ;;  %v567_v22 = vshll.u32 %v562_v18, 16  ;;  %v572_v23 = vshll.u32 %v563_v19, 16 }
  0xdb   : > { %v565_v25 = vshrl.u32 %v562_v18, 16 }
  0xdc   : > { %v721_v24 = vsel %vm448_vm2, %v719_v20, %v720_v21  ;;  %v569_v26 = vrot.slane %v567_v22, 1  ;;  %v574_v28 = vrot.slane %v572_v23, 1 }
  0xdd   : > { %779 = vmatmul.bf16.vlgmr.msrb.gmra.mxu1 %v721_v24 }
  0xde   : > { %v570_v27 = vor.u32 %v569_v26, %v565_v25 }
  0xe0   : > { %v575_v29 = vsel %vm340_vm0, %v570_v27, %v574_v28 }
  0xe1   : > { %633 = vmatmul.bf16.vlgmr.msra.gmra.mxu3 %v575_v29 }
 0x157   : > { %v697_v30 = vpop.f32.mrf.mxu0 }
 0x15a   : > { %v780_v31 = vpop.f32.mrf.mxu1 }
 0x15f   : > { %v699_v39 = vpop.f32.mrf.mxu0 }
 0x162   : > { %v782_v43 = vpop.f32.mrf.mxu1 }
 0x164   : > { %v634_v32 = vpop.f32.mrf.mxu3 }
 0x165   : > { %v698_v33 = vadd.f32 %v697_v30, %v634_v32 }
 0x167   : > { %v785_v35 = vadd.f32 %v780_v31, %v698_v33 }
 0x169   : > { %v791_v37 = vmul.f32 %v1176_v34, %v785_v35 }
 0x16b   : > { %v797_v38 = vadd.f32 %v1177_v36, %v791_v37 }
 0x16c   : > { %v636_v40 = vpop.f32.mrf.mxu3 }
 0x16d   : > { %v799_v41 = vmax.f32 %v797_v38, 0.0  ;;  %v700_v42 = vadd.f32 %v699_v39, %v636_v40 }
 0x16f   : > { %801 = vst [vmem:[%s305_s17] sm:$0xff] %v799_v41  ;;  %v786_v44 = vadd.f32 %v782_v43, %v700_v42 }
 0x171   : > { %v792_v45 = vmul.f32 %v1176_v34, %v786_v44 }
 0x173   : > { %v798_v46 = vadd.f32 %v1177_v36, %v792_v45 }
 0x175   : > { %v800_v47 = vmax.f32 %v798_v46, 0.0 }
 0x177   : > { %802 = vst [vmem:[%s305_s17 + $0x8] sm:$0xff] %v800_v47 }
 0x178   : > { %1265 = shalt.err (!%p1262_p8)
}
 0x179   : > { %s1314_s23 = smov 128   ;;  %s1315_s15 = smov 8  }
 0x17a   : > { %1118 = dma.vmem_to_hbm [thread:$0]  (%p1394_p5), %s817_s18, 256, %s819_s19, %s804_s28, %s1314_s23, %s1314_s23, %s1315_s15  }
 0x17b PF: > { %p1135_p9 = scmp.ge.s32.totalorder %s1308_s27, 2  ;;  %s833_s13 = sand.u32 1, %s1296_s24  }
 0x17c   : > { %s834_s16 = scalar_lea.sflag [#allocation4], %s833_s13 }
 0x17d   : > { %p1128_p10 = pnand %p1135_p9, %p1398_p6 }
 0x17f   : > { %p1129_p11 = pneg %p1128_p10 }
 0x181   : > { %1291 = dma.done.wait (%p1129_p11), %s834_s16, 256  }
 0x182   : > { %1293 = vsyncadd (%p1129_p11), %s834_s16, 4294967040  ;;  %p19_p12 = scmp.ge.s32.totalorder %s1381_s30, 4   ;;  %s1502_s24 = smov %s1300_s25 }
 0x183   : > { %s1503_s25 = smov %s1304_s26  ;;  %s1504_s26 = smov %s1392_s10 }
 0x184   : > { %s1505_s27 = smov %s1381_s30  ;;  %21 = sbr.rel (!%p19_p12) target bundleno = 5 (0x5), region = 96 }
 0x189   :  { %840 = vsyncpa [#allocation3], 1 }
 0x18a   :  { %842 = vsyncpa [#allocation3 + $0x1], 1 }
 0x18b   :  { %843 = vsyncpa [#allocation6], 1 }
 0x18c   :  { %844 = vsyncpa [#allocation4], 1 }
 0x18d   :  { %846 = vsyncpa [#allocation4 + $0x1], 1 }

</bundles_post_ra>
